<compile_context>
chip_gen: v5e
topology: v5e:2x2
jax: 0.10.0
libtpu: 0.0.40
codegen_flags: <defaults>
</compile_context>

<pallas_src>
import functools

import jax
import jax.numpy as jnp
from jax.experimental import pallas as pl
from jax.experimental.pallas import tpu as pltpu


def _sigmoid(z):
    # Exact sigmoid (exp lands on the EUP); keeps full f32 fidelity vs. the reference.
    return 1.0 / (1.0 + jnp.exp(-z))


def _fused_mlp_kernel(x_ref, *refs, sigmoid_flags):
    """One grid step: push a (TM, Din) batch tile through the whole MLP in VMEM."""
    o_ref = refs[-1]
    wb_refs = refs[:-1]
    h = x_ref[...].astype(jnp.float32)
    for i, apply_sigmoid in enumerate(sigmoid_flags):
        w = wb_refs[2 * i][...]          # (Din_i, Dout_i), resident in VMEM
        b = wb_refs[2 * i + 1][...]      # (1, Dout_i) -> broadcasts over batch rows
        h = jnp.dot(h, w, preferred_element_type=jnp.float32) + b
        if apply_sigmoid:
            h = _sigmoid(h)
    o_ref[...] = h.astype(o_ref.dtype)


def _round_up(x, m):
    return ((x + m - 1) // m) * m


def _choose_batch_tiling(batch, *, max_tm=1024, megacore_min_rows=512):
    """Pick (tm, b_pad, n_tiles) with minimal padding.

    - Big tiles (up to max_tm rows) amortize per-grid-step overhead and the narrow
      masked output store.
    - For large batches, force an even number of tiles so dimension_semantics
      ("parallel",) can shard the grid across v7x's 2 TensorCores (neutral on
      single-TC v5e/v6e).
    - tm is rounded up to a multiple of 8 (f32 sublane), so the (tm, Din) block is
      always layout-legal; padded rows are sliced off by the caller.
    """
    n_tiles = max(1, pl.cdiv(batch, max_tm))
    if batch >= megacore_min_rows:
        n_tiles = max(n_tiles, 2)
        if n_tiles % 2:
            n_tiles += 1
    tm = _round_up(pl.cdiv(batch, n_tiles), 8)
    b_pad = n_tiles * tm
    return tm, b_pad, n_tiles


def fused_mlp(x, layers, sigmoid_flags, *, max_tm=1024):
    """Run the whole MLP in one pallas_call.

    x:             (B, Din) float32.
    layers:        list of (W(in, out), b(out,)) pairs.
    sigmoid_flags: sigmoid_flags[i] == True iff layer i is followed by Sigmoid.
    """
    assert len(layers) == len(sigmoid_flags) and len(layers) >= 1
    B, Din = x.shape
    Dout = layers[-1][0].shape[1]

    tm, b_pad, n_tiles = _choose_batch_tiling(B, max_tm=max_tm)
    if b_pad != B:
        x = jnp.pad(x, ((0, b_pad - B), (0, 0)))

    # Weights/biases as whole-array resident blocks (bias reshape hoisted here, once).
    # Constant index_map (0, 0) => Pallas fetches each block once and keeps it resident
    # across all grid steps (no per-step DMA for the W/b inputs).
    wb_inputs = []
    wb_specs = []
    for (w, b) in layers:
        wb_inputs.append(w)
        wb_inputs.append(b.reshape(1, -1))
        wb_specs.append(pl.BlockSpec(w.shape, lambda i: (0, 0)))
        wb_specs.append(pl.BlockSpec((1, b.shape[0]), lambda i: (0, 0)))

    # Explicit VMEM budget: double-buffered x/out tiles + live intermediate activations
    # + resident weights, x2 headroom, floored at 16 MiB (<= every generation's default
    # scoped limit) and capped at v7x's 64 MiB physical VMEM.
    widths = [Din] + [w.shape[1] for (w, _) in layers]
    act_bytes = 2 * 4 * tm * (widths[0] + widths[-1])          # pipelined x / out tiles
    inter_bytes = 4 * tm * sum(widths[1:])                      # intermediate activations
    wb_bytes = 2 * 4 * sum(int(w.size) + int(b.size) for (w, b) in layers)
    vmem_limit = min(64 << 20, max(16 << 20, 2 * (act_bytes + inter_bytes + wb_bytes)))

    kernel = functools.partial(_fused_mlp_kernel, sigmoid_flags=tuple(sigmoid_flags))

    out = pl.pallas_call(
        kernel,
        out_shape=jax.ShapeDtypeStruct((b_pad, Dout), jnp.float32),
        grid_spec=pltpu.PrefetchScalarGridSpec(
            num_scalar_prefetch=0,
            grid=(n_tiles,),
            in_specs=[pl.BlockSpec((tm, Din), lambda i: (i, 0))] + wb_specs,
            out_specs=pl.BlockSpec((tm, Dout), lambda i: (i, 0)),
        ),
        compiler_params=pltpu.CompilerParams(
            # Batch tiles are independent -> shard across TensorCores on v7x.
            dimension_semantics=("parallel",),
            vmem_limit_bytes=vmem_limit,
        ),
    )(x, *wb_inputs)
    return out[:B]


def init_net_params(key, input_size, hidden_layers_sizes, output_size):
    """Deterministic init matching the PyTorch layer shapes.

    Layer i: Linear(sizes[i] -> sizes[i+1]); W stored as (in, out), b as (out,).
    """
    sizes = [input_size] + list(hidden_layers_sizes) + [output_size]
    params = []
    for i in range(len(sizes) - 1):
        key, kw, kb = jax.random.split(key, 3)
        fan_in = sizes[i]
        bound = 1.0 / jnp.sqrt(fan_in)  # torch.nn.Linear default uniform bound
        w = jax.random.uniform(kw, (sizes[i], sizes[i + 1]),
                               minval=-bound, maxval=bound, dtype=jnp.float32)
        b = jax.random.uniform(kb, (sizes[i + 1],),
                               minval=-bound, maxval=bound, dtype=jnp.float32)
        params.append((w, b))
    return params


def net_forward(params, x):
    """Net.forward: every layer except the last is followed by Sigmoid."""
    n = len(params)
    flags = [True] * (n - 1) + [False]
    return fused_mlp(x, params, flags)


def net_get_features(params, x):
    """Net.get_features: all layers except the final Linear (each with Sigmoid)."""
    layers = params[:-1]
    flags = [True] * len(layers)
    return fused_mlp(x, layers, flags)


def _reference_forward(params, x, *, include_last=True):
    layers = params if include_last else params[:-1]
    h = x
    for i, (w, b) in enumerate(layers):
        h = h @ w + b
        if include_last and i == len(layers) - 1:
            break
        h = jax.nn.sigmoid(h)
    return h


if __name__ == "__main__":
    # Small shapes consistent with the module's constructor.
    batch = 8
    input_size = 32
    hidden_layers_sizes = [32, 32]
    output_size = 16

    key = jax.random.PRNGKey(0)
    key, kx = jax.random.split(key)
    x = jax.random.normal(kx, (batch, input_size), dtype=jnp.float32)

    params = init_net_params(key, input_size, hidden_layers_sizes, output_size)

    # Fused forward pass (single small tile).
    out = jax.block_until_ready(net_forward(params, x))
    ref = _reference_forward(params, x, include_last=True)
    assert out.shape == (batch, output_size)
    assert jnp.allclose(out, ref, atol=1e-5, rtol=1e-5)

    # Feature extractor path.
    feats = jax.block_until_ready(net_get_features(params, x))
    feats_ref = _reference_forward(params, x, include_last=False)
    assert feats.shape == (batch, hidden_layers_sizes[-1])
    assert jnp.allclose(feats, feats_ref, atol=1e-5, rtol=1e-5)

    # Pad-minimizing tiling path: B=130 -> one 136-row tile (6 pad rows, not 126).
    key, kx2 = jax.random.split(key)
    x_mid = jax.random.normal(kx2, (130, input_size), dtype=jnp.float32)
    out_mid = jax.block_until_ready(net_forward(params, x_mid))
    ref_mid = _reference_forward(params, x_mid, include_last=True)
    assert out_mid.shape == (130, output_size)
    assert jnp.allclose(out_mid, ref_mid, atol=1e-5, rtol=1e-5)

    # Megacore-forced multi-tile path: B=600 -> 2 tiles of 304 rows ("parallel" grid).
    key, kx3 = jax.random.split(key)
    x_big = jax.random.normal(kx3, (600, input_size), dtype=jnp.float32)
    out_big = jax.block_until_ready(net_forward(params, x_big))
    ref_big = _reference_forward(params, x_big, include_last=True)
    assert out_big.shape == (600, output_size)
    assert jnp.allclose(out_big, ref_big, atol=1e-5, rtol=1e-5)

    print("KERNEL_OK")
</pallas_src>

<mosaic_0001>
module attributes {stable_mosaic.version = 11 : i64} {
  func.func @_fused_mlp_kernel(%arg0: i32, %arg1: memref<8x32xf32, #tpu.memory_space<vmem>>, %arg2: memref<32x32xf32, #tpu.memory_space<vmem>>, %arg3: memref<1x32xf32, #tpu.memory_space<vmem>>, %arg4: memref<32x32xf32, #tpu.memory_space<vmem>>, %arg5: memref<1x32xf32, #tpu.memory_space<vmem>>, %arg6: memref<32x16xf32, #tpu.memory_space<vmem>>, %arg7: memref<1x16xf32, #tpu.memory_space<vmem>>, %arg8: memref<8x16xf32, #tpu.memory_space<vmem>>) attributes {dimension_semantics = [#tpu.dimension_semantics<parallel>], iteration_bounds = array<i64: 1>, scalar_prefetch = 0 : i64, scratch_operands = 0 : i64, tpu.core_type = #tpu.core_type<tc>, window_params = [{transform_indices = @transform_0, window_bounds = array<i64: 8, 32>}, {pipeline_mode = #tpu.pipeline_mode<synchronous>, transform_indices = @transform_1, window_bounds = array<i64: 32, 32>}, {pipeline_mode = #tpu.pipeline_mode<synchronous>, transform_indices = @transform_2, window_bounds = array<i64: 1, 32>}, {pipeline_mode = #tpu.pipeline_mode<synchronous>, transform_indices = @transform_3, window_bounds = array<i64: 32, 32>}, {pipeline_mode = #tpu.pipeline_mode<synchronous>, transform_indices = @transform_4, window_bounds = array<i64: 1, 32>}, {pipeline_mode = #tpu.pipeline_mode<synchronous>, transform_indices = @transform_5, window_bounds = array<i64: 32, 16>}, {pipeline_mode = #tpu.pipeline_mode<synchronous>, transform_indices = @transform_6, window_bounds = array<i64: 1, 16>}, {transform_indices = @transform_7, window_bounds = array<i64: 8, 16>}]} {
    %c0 = arith.constant 0 : index
    %c0_0 = arith.constant 0 : index
    %0 = vector.load %arg1[%c0, %c0_0] : memref<8x32xf32, #tpu.memory_space<vmem>>, vector<8x32xf32>
    %c0_1 = arith.constant 0 : index
    %c0_2 = arith.constant 0 : index
    %1 = vector.load %arg2[%c0_1, %c0_2] : memref<32x32xf32, #tpu.memory_space<vmem>>, vector<32x32xf32>
    %c0_3 = arith.constant 0 : index
    %c0_4 = arith.constant 0 : index
    %2 = vector.load %arg3[%c0_3, %c0_4] : memref<1x32xf32, #tpu.memory_space<vmem>>, vector<1x32xf32>
    %cst = arith.constant dense<0.000000e+00> : vector<8x32xf32>
    %3 = tpu.matmul %0, %1, %cst {dimension_numbers = #tpu.dot_dimension_numbers<[1], [0], [0], [1], [0, 0, 1, 1], [], []>} : vector<8x32xf32>, vector<32x32xf32>, vector<8x32xf32> -> vector<8x32xf32>
    %4 = vector.broadcast %2 : vector<1x32xf32> to vector<8x32xf32>
    %5 = arith.addf %3, %4 : vector<8x32xf32>
    %cst_5 = arith.constant 0.000000e+00 : f32
    %6 = vector.broadcast %cst_5 : f32 to vector<8x32xf32>
    %7 = arith.subf %6, %5 : vector<8x32xf32>
    %8 = math.exp %7 : vector<8x32xf32>
    %cst_6 = arith.constant 1.000000e+00 : f32
    %9 = vector.broadcast %cst_6 : f32 to vector<8x32xf32>
    %10 = arith.addf %9, %8 : vector<8x32xf32>
    %cst_7 = arith.constant 1.000000e+00 : f32
    %11 = vector.broadcast %cst_7 : f32 to vector<8x32xf32>
    %12 = arith.divf %11, %10 : vector<8x32xf32>
    %c0_8 = arith.constant 0 : index
    %c0_9 = arith.constant 0 : index
    %13 = vector.load %arg4[%c0_8, %c0_9] : memref<32x32xf32, #tpu.memory_space<vmem>>, vector<32x32xf32>
    %c0_10 = arith.constant 0 : index
    %c0_11 = arith.constant 0 : index
    %14 = vector.load %arg5[%c0_10, %c0_11] : memref<1x32xf32, #tpu.memory_space<vmem>>, vector<1x32xf32>
    %cst_12 = arith.constant dense<0.000000e+00> : vector<8x32xf32>
    %15 = tpu.matmul %12, %13, %cst_12 {dimension_numbers = #tpu.dot_dimension_numbers<[1], [0], [0], [1], [0, 0, 1, 1], [], []>} : vector<8x32xf32>, vector<32x32xf32>, vector<8x32xf32> -> vector<8x32xf32>
    %16 = vector.broadcast %14 : vector<1x32xf32> to vector<8x32xf32>
    %17 = arith.addf %15, %16 : vector<8x32xf32>
    %cst_13 = arith.constant 0.000000e+00 : f32
    %18 = vector.broadcast %cst_13 : f32 to vector<8x32xf32>
    %19 = arith.subf %18, %17 : vector<8x32xf32>
    %20 = math.exp %19 : vector<8x32xf32>
    %cst_14 = arith.constant 1.000000e+00 : f32
    %21 = vector.broadcast %cst_14 : f32 to vector<8x32xf32>
    %22 = arith.addf %21, %20 : vector<8x32xf32>
    %cst_15 = arith.constant 1.000000e+00 : f32
    %23 = vector.broadcast %cst_15 : f32 to vector<8x32xf32>
    %24 = arith.divf %23, %22 : vector<8x32xf32>
    %c0_16 = arith.constant 0 : index
    %c0_17 = arith.constant 0 : index
    %25 = vector.load %arg6[%c0_16, %c0_17] : memref<32x16xf32, #tpu.memory_space<vmem>>, vector<32x16xf32>
    %c0_18 = arith.constant 0 : index
    %c0_19 = arith.constant 0 : index
    %26 = vector.load %arg7[%c0_18, %c0_19] : memref<1x16xf32, #tpu.memory_space<vmem>>, vector<1x16xf32>
    %cst_20 = arith.constant dense<0.000000e+00> : vector<8x16xf32>
    %27 = tpu.matmul %24, %25, %cst_20 {dimension_numbers = #tpu.dot_dimension_numbers<[1], [0], [0], [1], [0, 0, 1, 1], [], []>} : vector<8x32xf32>, vector<32x16xf32>, vector<8x16xf32> -> vector<8x16xf32>
    %28 = vector.broadcast %26 : vector<1x16xf32> to vector<8x16xf32>
    %29 = arith.addf %27, %28 : vector<8x16xf32>
    %c0_21 = arith.constant 0 : index
    %c0_22 = arith.constant 0 : index
    %30 = vector.load %arg8[%c0_21, %c0_22] : memref<8x16xf32, #tpu.memory_space<vmem>>, vector<8x16xf32>
    tpu.vector_store %arg8[%c0_21, %c0_22], %29 {strides = array<i32>} : memref<8x16xf32, #tpu.memory_space<vmem>>, vector<8x16xf32>,
    return
  }
  func.func @transform_0(%arg0: i32) -> (i32, i32) {
    %c0_i32 = arith.constant 0 : i32
    %c0_i32_0 = arith.constant 0 : i32
    return %arg0, %c0_i32 : i32, i32
  }
  func.func @transform_1(%arg0: i32) -> (i32, i32) {
    %c0_i32 = arith.constant 0 : i32
    %c0_i32_0 = arith.constant 0 : i32
    %c0_i32_1 = arith.constant 0 : i32
    return %c0_i32, %c0_i32_0 : i32, i32
  }
  func.func @transform_2(%arg0: i32) -> (i32, i32) {
    %c0_i32 = arith.constant 0 : i32
    %c0_i32_0 = arith.constant 0 : i32
    %c0_i32_1 = arith.constant 0 : i32
    return %c0_i32, %c0_i32_0 : i32, i32
  }
  func.func @transform_3(%arg0: i32) -> (i32, i32) {
    %c0_i32 = arith.constant 0 : i32
    %c0_i32_0 = arith.constant 0 : i32
    %c0_i32_1 = arith.constant 0 : i32
    return %c0_i32, %c0_i32_0 : i32, i32
  }
  func.func @transform_4(%arg0: i32) -> (i32, i32) {
    %c0_i32 = arith.constant 0 : i32
    %c0_i32_0 = arith.constant 0 : i32
    %c0_i32_1 = arith.constant 0 : i32
    return %c0_i32, %c0_i32_0 : i32, i32
  }
  func.func @transform_5(%arg0: i32) -> (i32, i32) {
    %c0_i32 = arith.constant 0 : i32
    %c0_i32_0 = arith.constant 0 : i32
    %c0_i32_1 = arith.constant 0 : i32
    return %c0_i32, %c0_i32_0 : i32, i32
  }
  func.func @transform_6(%arg0: i32) -> (i32, i32) {
    %c0_i32 = arith.constant 0 : i32
    %c0_i32_0 = arith.constant 0 : i32
    %c0_i32_1 = arith.constant 0 : i32
    return %c0_i32, %c0_i32_0 : i32, i32
  }
  func.func @transform_7(%arg0: i32) -> (i32, i32) {
    %c0_i32 = arith.constant 0 : i32
    %c0_i32_0 = arith.constant 0 : i32
    return %arg0, %c0_i32 : i32, i32
  }
}

</mosaic_0001>

<bundles_post_ra>
// kernel: tpu_custom_call.1
= control target key start
LH: loop header
LB: loop body
LE: loop exit
PB: predicated region body
PF: predicated region fallthrough
CT: control target
= control target key end

     0   :  { %12 = vsyncpa [#allocation3], 0  ;;  %s354_s0 = inlined_call_operand.vmem [shape: f32[8,32], index: 0, kind: input, shape index: {}]   ;;  %s355_s1 = inlined_call_operand.vmem [shape: f32[32,32], index: 1, kind: input, shape index: {}]   ;;  %s356_s2 = inlined_call_operand.vmem [shape: f32[1,32], index: 2, kind: input, shape index: {}]   ;;  %s357_s3 = inlined_call_operand.hbm [shape: f32[32,32], index: 3, kind: input, shape index: {}]   ;;  %s358_s4 = inlined_call_operand.vmem [shape: f32[1,32], index: 4, kind: input, shape index: {}]   ;;  %s359_s5 = inlined_call_operand.vmem [shape: f32[32,16], index: 5, kind: input, shape index: {}]   ;;  %s360_s6 = inlined_call_operand.vmem [shape: f32[1,16], index: 6, kind: input, shape index: {}]   ;;  %s361_s7 = inlined_call_operand.hbm [shape: f32[8,16], index: 7, kind: output, shape index: {}]  }
   0x1   :  { %13 = vsyncpa [#allocation4], 0  ;;  %s24_s26 = sshll.u32 %s357_s3, 4  ;;  %s265_s27 = smov [#allocation2]   ;;  %s25_s26 = int_to_ptr.hbm [resolvable:$true] %s24_s26 }
   0x2   :  { %s26_s28 = sshll.u32 %s265_s27, 4  ;;  %s266_s29 = smov 128   ;;  %s27_s28 = int_to_ptr.vmem [resolvable:$true] %s26_s28 }
   0x3   :  { %s267_s30 = smov 8  }
   0x4   :  { %32 = dma.hbm_to_vmem [thread:$0]  %s25_s26, 512, %s27_s28, [#allocation3], %s266_s29, %s266_s29, %s267_s30  }
   0x5   :  { %261 = dma.done.wait [#allocation3], 512  }
   0x6   :  { %262 = vsyncadd [#allocation3], 4294966784  ;;  %v47_v0 = vld [vmem:[%s355_s1 + $0x18] sm:$0xff]  ;;  %v46_v1 = vld [vmem:[%s355_s1 + $0x10] sm:$0xff]  ;;  %vm52_vm0 = vcmask 261120   ;;  %s268_s26 = smov [#allocation5]  }
   0x7   :  { %68 = vmatpush.msra.mxu0 %v47_v0  ;;  %v45_v2 = vld [vmem:[%s355_s1 + $0x8] sm:$0xff]  ;;  %v44_v3 = vld [vmem:[%s355_s1] sm:$0xff]  ;;  %v98_v5 = vld [vmem:[#allocation2 + $0x18] sm:$0xff]  ;;  %s183_s27 = sshll.u32 %s268_s26, 4  ;;  %s185_s30 = sshll.u32 %s361_s7, 4  ;;  %vm176_vm9 = vcmask 130048   ;;  %s184_s27 = int_to_ptr.vmem [resolvable:$true] %s183_s27  ;;  %s186_s30 = int_to_ptr.hbm [resolvable:$true] %s185_s30 }
   0x8   :  { %v43_v4 = vld [vmem:[%s354_s0] sm:$0xff]  ;;  %v97_v6 = vld [vmem:[#allocation2 + $0x10] sm:$0xff]  ;;  %118 = vmatpush.msra.mxu1 %v98_v5  ;;  %v96_v7 = vld [vmem:[#allocation2 + $0x8] sm:$0xff] }
   0x9   :  { %69 = vmatpush.msra.mxu0 %v46_v1  ;;  %v95_v8 = vld [vmem:[#allocation2] sm:$0xff]  ;;  %v148_v26 = vld [vmem:[%s359_s5 + $0x18] sm:$0xff]  ;;  %v147_v27 = vld [vmem:[%s359_s5 + $0x10] sm:$0xff] }
   0xa   :  { %119 = vmatpush.msra.mxu1 %v97_v6  ;;  %v202_v9 = vld [vmem:[%s356_s2] ss:$0 sm:$0xff]  ;;  %168 = vmatpush.msra.mxu2 %v148_v26  ;;  %v146_v28 = vld [vmem:[%s359_s5 + $0x8] sm:$0xff] }
   0xb   :  { %70 = vmatpush.msra.mxu0 %v45_v2  ;;  %v145_v29 = vld [vmem:[%s359_s5] sm:$0xff] }
   0xc   :  { %120 = vmatpush.msra.mxu1 %v96_v7  ;;  %169 = vmatpush.msra.mxu2 %v147_v27  ;;  %v203_v30 = vld [vmem:[%s358_s4] ss:$0 sm:$0xff] }
   0xd   :  { %71 = vmatpush.msra.mxu0 %v44_v3  ;;  %v204_v47 = vld [vmem:[%s360_s6] ss:$0 sm:$0xff] }
   0xe   :  { %195 = vmatmul.msk.f32.vlgmr.msra.gmra.mxu0 %vm52_vm0, %v43_v4  ;;  %121 = vmatpush.msra.mxu1 %v95_v8 }
   0xf   :  { %170 = vmatpush.msra.mxu2 %v146_v28 }
  0x11   :  { %171 = vmatpush.msra.mxu2 %v145_v29 }
  0x8b   :  { %v73_v10 = vpop.f32.mrf.mxu0 }
  0x8c   :  { %v74_v11 = vadd.f32 %v202_v9, %v73_v10 }
  0x8e   :  { %v76_v12 = vsub.f32 0.0, %v74_v11 }
  0x90   :  { %v77_v13 = vmul.f32 1.442695, %v76_v12 }
  0x92   :  { %205 = vpow2.f32 %v77_v13 }
  0x98   :  { %v206_v14 = vpop.eup %205 }
  0x99   :  { %v79_v15 = vadd.f32 1.0, %v206_v14 }
  0x9b   :  { %207 = vrcp.f32 %v79_v15  ;;  %v91_v19 = vand.u32 2147483648, %v79_v15  ;;  %v89_v21 = vand.u32 2147483647, %v79_v15  ;;  %vm85_vm2 = vweird.f32 %v79_v15 }
  0x9d   :  { %v92_v23 = vor.u32 1.1754944e-38, %v91_v19  ;;  %vm90_vm4 = vcmp.eq.f32.partialorder %v89_v21, 8.507059e+37 }
  0xa1   :  { %v208_v16 = vpop.eup %207 }
  0xa2   :  { %v81_v17 = vmul.f32 %v208_v16, %v79_v15  ;;  %vm86_vm1 = vweird.f32 %v208_v16 }
  0xa3   :  { %vm87_vm3 = vmor %vm85_vm2, %vm86_vm1 }
  0xa4   :  { %v82_v18 = vsub.f32 1.0, %v81_v17 }
  0xa6   :  { %v83_v20 = vmul.f32 %v208_v16, %v82_v18 }
  0xa8   :  { %v84_v22 = vadd.f32 %v208_v16, %v83_v20 }
  0xaa   :  { %v88_v24 = vsel %vm87_vm3, %v208_v16, %v84_v22 }
  0xab   :  { %v93_v25 = vsel %vm90_vm4, %v92_v23, %v88_v24 }
  0xac   :  { %196 = vmatmul.msk.f32.vlgmr.msra.gmra.mxu1 %vm52_vm0, %v93_v25 }
 0x129   :  { %v123_v31 = vpop.f32.mrf.mxu1 }
 0x12a   :  { %v124_v32 = vadd.f32 %v203_v30, %v123_v31 }
 0x12c   :  { %v126_v33 = vsub.f32 0.0, %v124_v32 }
 0x12e   :  { %v127_v34 = vmul.f32 1.442695, %v126_v33 }
 0x130   :  { %209 = vpow2.f32 %v127_v34 }
 0x136   :  { %v210_v35 = vpop.eup %209 }
 0x137   :  { %v129_v36 = vadd.f32 1.0, %v210_v35 }
 0x139   :  { %211 = vrcp.f32 %v129_v36  ;;  %v141_v40 = vand.u32 2147483648, %v129_v36  ;;  %v139_v42 = vand.u32 2147483647, %v129_v36  ;;  %vm135_vm6 = vweird.f32 %v129_v36 }
 0x13b   :  { %v142_v44 = vor.u32 1.1754944e-38, %v141_v40  ;;  %vm140_vm8 = vcmp.eq.f32.partialorder %v139_v42, 8.507059e+37 }
 0x13f   :  { %v212_v37 = vpop.eup %211 }
 0x140   :  { %v131_v38 = vmul.f32 %v212_v37, %v129_v36  ;;  %vm136_vm5 = vweird.f32 %v212_v37 }
 0x141   :  { %vm137_vm7 = vmor %vm135_vm6, %vm136_vm5 }
 0x142   :  { %v132_v39 = vsub.f32 1.0, %v131_v38 }
 0x144   :  { %v133_v41 = vmul.f32 %v212_v37, %v132_v39 }
 0x146   :  { %v134_v43 = vadd.f32 %v212_v37, %v133_v41 }
 0x148   :  { %v138_v45 = vsel %vm137_vm7, %v212_v37, %v134_v43 }
 0x149   :  { %v143_v46 = vsel %vm140_vm8, %v142_v44, %v138_v45 }
 0x14a   :  { %197 = vmatmul.msk.f32.vlgmr.msra.gmra.mxu2 %vm52_vm0, %v143_v46 }
 0x1cd   :  { %v173_v48 = vpop.f32.mrf.mxu2 }
 0x1ce   :  { %v174_v49 = vadd.f32 %v204_v47, %v173_v48 }
 0x1d0   :  { %177 = vst.msk [vmem:[#allocation5] sm:$0xff] %vm176_vm9, %v174_v49 }
 0x1d1   :  { %188 = dma.vmem_to_hbm [thread:$0]  %s184_s27, 128, %s186_s30, [#allocation4]  }
 0x1d2   :  { %263 = dma.done.wait [#allocation4], 128  }
 0x1d3   :  { %264 = vsyncadd [#allocation4], 4294967168 }
 0x1d4   :  { %193 = vsyncpa [#allocation3], 1 }
 0x1d5   :  { %194 = vsyncpa [#allocation4], 1 }

</bundles_post_ra>
